<compile_context>
chip_gen: v7x
topology: tpu7x:2x2x1
jax: 0.10.0
libtpu: 0.0.40
codegen_flags: <defaults>
</compile_context>

<pallas_src>
import functools

import jax
import jax.numpy as jnp
from jax.experimental import pallas as pl
from jax.experimental.pallas import tpu as pltpu


def transformer_unit_kernel(
    x_ref,        # (M, E)          flattened activations, f32, M = batch_block*S
    wqkv_ref,     # (E, 3*H*E)      compute dtype; Wq columns pre-scaled by E^-0.5
    wz_ref,       # (H*E, E)        compute dtype
    bz_ref,       # (1, E)          f32
    g1_ref,       # (1, E)          layernorm_1 gamma
    be1_ref,      # (1, E)          layernorm_1 beta
    w1_ref,       # (E, F)          compute dtype
    b1_ref,       # (1, F)          f32
    w2_ref,       # (F, E)          compute dtype
    b2_ref,       # (1, E)          f32
    g2_ref,       # (1, E)          layernorm_2 gamma
    be2_ref,      # (1, E)          layernorm_2 beta
    z_out_ref,    # (M, E)
    attn_out_ref, # (batch_block, S, S)
    *,
    num_heads,
    seq_len,
):
    H, S = num_heads, seq_len
    M, E = x_ref.shape
    Bt = M // S
    cdt = wqkv_ref.dtype            # MXU operand dtype (bf16 or f32)

    x = x_ref[...].astype(jnp.float32)                       # (M, E)

    # ---- fused Q/K/V projection: one MXU push with N = 3*H*E ----------------
    qkv = jnp.dot(x.astype(cdt), wqkv_ref[...],
                  preferred_element_type=jnp.float32)         # (M, 3*H*E)

    wz = wz_ref[...]
    z_acc = jnp.zeros((M, E), jnp.float32)
    attn_acc = jnp.zeros((Bt, S, S), jnp.float32)

    # H is small -> static unroll; Wz projection accumulated in-loop (no
    # concat, no long-lived per-head temporaries).
    for h in range(H):
        q = qkv[:, h * E:(h + 1) * E].reshape(Bt, S, E).astype(cdt)
        k = qkv[:, (H + h) * E:(H + h + 1) * E].reshape(Bt, S, E).astype(cdt)
        v = qkv[:, (2 * H + h) * E:(2 * H + h + 1) * E].reshape(Bt, S, E).astype(cdt)

        # contraction on the feature axis -- no materialized transpose of k
        s = jnp.einsum("bqe,bke->bqk", q, k,
                       preferred_element_type=jnp.float32)    # (Bt, S, S)
        s = s - jnp.max(s, axis=-1, keepdims=True)
        e = jnp.exp(s)
        p = e * pl.reciprocal(jnp.sum(e, axis=-1, keepdims=True), approx=True)
        attn_acc = attn_acc + p

        head = jnp.einsum("bqk,bke->bqe", p.astype(cdt), v,
                          preferred_element_type=jnp.float32)  # (Bt, S, E)
        z_acc = z_acc + jnp.dot(head.reshape(M, E).astype(cdt),
                                wz[h * E:(h + 1) * E, :],
                                preferred_element_type=jnp.float32)

    z = z_acc + bz_ref[...]

    # ---- layernorm_1(z + X)  (f32) -------------------------------------------
    y = z + x
    mu = jnp.mean(y, axis=-1, keepdims=True)
    var = jnp.mean((y - mu) ** 2, axis=-1, keepdims=True)
    y1 = (y - mu) * jax.lax.rsqrt(var + 1e-5) * g1_ref[...] + be1_ref[...]

    # ---- MLP: Linear -> ReLU -> Linear ---------------------------------------
    h1 = jnp.dot(y1.astype(cdt), w1_ref[...],
                 preferred_element_type=jnp.float32) + b1_ref[...]
    h1 = jnp.maximum(h1, 0.0)
    zff = jnp.dot(h1.astype(cdt), w2_ref[...],
                  preferred_element_type=jnp.float32) + b2_ref[...]

    # ---- layernorm_2(z_ff + LN1 output)   (dropout == identity) --------------
    y2 = zff + y1
    mu2 = jnp.mean(y2, axis=-1, keepdims=True)
    var2 = jnp.mean((y2 - mu2) ** 2, axis=-1, keepdims=True)
    out = (y2 - mu2) * jax.lax.rsqrt(var2 + 1e-5) * g2_ref[...] + be2_ref[...]

    z_out_ref[...] = out.astype(z_out_ref.dtype)
    attn_out_ref[...] = (attn_acc * (1.0 / H)).astype(attn_out_ref.dtype)


def transformer_unit(x, params, *, compute_dtype=jnp.bfloat16, batch_block=None):
    """x: (B, S, E) float32.  params: dict of weights (see init_params).

    compute_dtype: operand dtype fed to the MXU matmuls (accumulation is always
    f32; softmax / LayerNorm math is always f32).  Default bf16 for throughput.
    """
    B, S, E = x.shape
    H = params["wq"].shape[0]
    F = params["mlp_w1"].shape[1]

    if batch_block is None:
        # One big block per step amortizes per-step pipeline overhead; keep 2
        # parallel steps when B is even so both v7x TensorCores have work.
        batch_block = B // 2 if (B >= 2 and B % 2 == 0) else B
    assert B % batch_block == 0
    num_blocks = B // batch_block
    M = batch_block * S

    # ---- weight packing (once, in XLA, outside the kernel) -------------------
    # Fold the full 1/sqrt(E) attention scale into Wq and pack Q/K/V of all
    # heads into a single (E, 3*H*E) matrix for one fused projection.
    scale = 1.0 / (float(E) ** 0.5)
    wq = params["wq"] * scale                                # (H, E, E)

    def _stack(w):                                           # (H, E, E) -> (E, H*E)
        return jnp.transpose(w, (1, 0, 2)).reshape(E, H * E)

    w_qkv = jnp.concatenate(
        [_stack(wq), _stack(params["wk"]), _stack(params["wv"])],
        axis=-1).astype(compute_dtype)                       # (E, 3*H*E)
    wz = params["wz"].astype(compute_dtype)                  # (H*E, E)
    w1 = params["mlp_w1"].astype(compute_dtype)              # (E, F)
    w2 = params["mlp_w2"].astype(compute_dtype)              # (F, E)

    x_flat = x.reshape(B * S, E)                             # free reshape in HBM

    def fixed(shape):
        n = len(shape)
        return pl.BlockSpec(shape, lambda i, _n=n: (0,) * _n)

    in_specs = [
        pl.BlockSpec((M, E), lambda i: (i, 0)),              # x (flattened)
        fixed((E, 3 * H * E)),                               # fused Wqkv
        fixed((H * E, E)),                                   # Wz
        fixed((1, E)),                                       # bz
        fixed((1, E)), fixed((1, E)),                        # ln1 gamma / beta
        fixed((E, F)), fixed((1, F)),                        # mlp w1 / b1
        fixed((F, E)), fixed((1, E)),                        # mlp w2 / b2
        fixed((1, E)), fixed((1, E)),                        # ln2 gamma / beta
    ]
    out_specs = (
        pl.BlockSpec((M, E), lambda i: (i, 0)),              # z (flattened)
        pl.BlockSpec((batch_block, S, S), lambda i: (i, 0, 0)),
    )
    out_shape = (
        jax.ShapeDtypeStruct((B * S, E), x.dtype),
        jax.ShapeDtypeStruct((B, S, S), x.dtype),
    )

    grid_spec = pltpu.PrefetchScalarGridSpec(
        num_scalar_prefetch=0,
        grid=(num_blocks,),
        in_specs=in_specs,
        out_specs=out_specs,
    )
    kernel = functools.partial(transformer_unit_kernel, num_heads=H, seq_len=S)
    z_flat, attn = pl.pallas_call(
        kernel,
        grid_spec=grid_spec,
        out_shape=out_shape,
        compiler_params=pltpu.CompilerParams(
            dimension_semantics=("parallel",)),
    )(x_flat, w_qkv, wz, params["bz"], params["ln1_g"], params["ln1_b"],
      w1, params["mlp_b1"], w2, params["mlp_b2"],
      params["ln2_g"], params["ln2_b"])
    return z_flat.reshape(B, S, E), attn


def init_params(key, input_size, num_heads, mlp_factor):
    """Deterministic synthetic parameters. Linear weights stored (in, out)."""
    E, H, F = input_size, num_heads, input_size * mlp_factor
    ks = jax.random.split(key, 8)
    s = 0.1
    return {
        "wq": jax.random.normal(ks[0], (H, E, E), jnp.float32) * s,
        "wk": jax.random.normal(ks[1], (H, E, E), jnp.float32) * s,
        "wv": jax.random.normal(ks[2], (H, E, E), jnp.float32) * s,
        "wz": jax.random.normal(ks[3], (H * E, E), jnp.float32) * s,
        "bz": jax.random.normal(ks[4], (1, E), jnp.float32) * s,
        "ln1_g": jnp.ones((1, E), jnp.float32),
        "ln1_b": jnp.zeros((1, E), jnp.float32),
        "mlp_w1": jax.random.normal(ks[5], (E, F), jnp.float32) * s,
        "mlp_b1": jax.random.normal(ks[6], (1, F), jnp.float32) * s,
        "mlp_w2": jax.random.normal(ks[7], (F, E), jnp.float32) * s,
        "mlp_b2": jnp.zeros((1, E), jnp.float32),
        "ln2_g": jnp.ones((1, E), jnp.float32),
        "ln2_b": jnp.zeros((1, E), jnp.float32),
    }


def reference(x, p):
    """Pure-JAX (f32) reference of TransformerUnit.forward (inference)."""
    E = x.shape[-1]
    H = p["wq"].shape[0]
    scale = 1.0 / (float(E) ** 0.25)
    heads, attn_sum = [], 0.0
    for h in range(H):
        q = (x @ p["wq"][h]) * scale
        k = (x @ p["wk"][h]) * scale
        v = x @ p["wv"][h]
        a = jnp.einsum("bqd,bkd->bqk", q, k)
        w = jax.nn.softmax(a, axis=2)
        attn_sum = attn_sum + w
        heads.append(jnp.einsum("bqk,bkd->bqd", w, v))
    z = jnp.concatenate(heads, -1) @ p["wz"] + p["bz"][0]

    def ln(y, g, b):
        mu = jnp.mean(y, -1, keepdims=True)
        var = jnp.mean((y - mu) ** 2, -1, keepdims=True)
        return (y - mu) * jax.lax.rsqrt(var + 1e-5) * g[0] + b[0]

    y1 = ln(z + x, p["ln1_g"], p["ln1_b"])
    h1 = jnp.maximum(y1 @ p["mlp_w1"] + p["mlp_b1"][0], 0.0)
    zff = h1 @ p["mlp_w2"] + p["mlp_b2"][0]
    y2 = ln(zff + y1, p["ln2_g"], p["ln2_b"])
    return y2, attn_sum / float(H)


if __name__ == "__main__":
    B, S, E = 2, 8, 32          # batch, seq, input_size
    H, MLP_FACTOR = 2, 2        # num_attn_heads, mlp_embed_factor (nonlin = ReLU)

    key = jax.random.PRNGKey(0)
    kx, kp = jax.random.split(key)
    x = jax.random.normal(kx, (B, S, E), jnp.float32)
    params = init_params(kp, E, H, MLP_FACTOR)

    z_ref, attn_ref = reference(x, params)

    # 1) exact-semantics check: f32 matmul operands (only the approx-EUP
    #    softmax reciprocal differs from the pure-JAX reference).
    z32, attn32 = transformer_unit(x, params, compute_dtype=jnp.float32)
    jax.block_until_ready((z32, attn32))
    assert jnp.allclose(z32, z_ref, atol=5e-3, rtol=5e-3)
    assert jnp.allclose(attn32, attn_ref, atol=2e-3, rtol=2e-3)

    # 2) default perf configuration: bf16 MXU operands, f32 accumulation,
    #    f32 softmax/LayerNorm (looser tolerance -- bf16 matmul precision).
    z, attn = transformer_unit(x, params)
    jax.block_until_ready((z, attn))
    assert jnp.allclose(z, z_ref, atol=1e-1, rtol=1e-1)
    assert jnp.allclose(attn, attn_ref, atol=5e-2, rtol=5e-2)

    print("KERNEL_OK")
</pallas_src>

<mosaic_0001>
module attributes {stable_mosaic.version = 11 : i64} {
  func.func @transformer_unit_kernel(%arg0: i32, %arg1: memref<8x32xf32, #tpu.memory_space<vmem>>, %arg2: memref<32x192xf32, #tpu.memory_space<vmem>>, %arg3: memref<64x32xf32, #tpu.memory_space<vmem>>, %arg4: memref<1x32xf32, #tpu.memory_space<vmem>>, %arg5: memref<1x32xf32, #tpu.memory_space<vmem>>, %arg6: memref<1x32xf32, #tpu.memory_space<vmem>>, %arg7: memref<32x64xf32, #tpu.memory_space<vmem>>, %arg8: memref<1x64xf32, #tpu.memory_space<vmem>>, %arg9: memref<64x32xf32, #tpu.memory_space<vmem>>, %arg10: memref<1x32xf32, #tpu.memory_space<vmem>>, %arg11: memref<1x32xf32, #tpu.memory_space<vmem>>, %arg12: memref<1x32xf32, #tpu.memory_space<vmem>>, %arg13: memref<8x32xf32, #tpu.memory_space<vmem>>, %arg14: memref<1x8x8xf32, #tpu.memory_space<vmem>>) attributes {dimension_semantics = [#tpu.dimension_semantics<parallel>], iteration_bounds = array<i64: 2>, scalar_prefetch = 0 : i64, scratch_operands = 0 : i64, tpu.core_type = #tpu.core_type<tc>, window_params = [{transform_indices = @transform_0, window_bounds = array<i64: 8, 32>}, {pipeline_mode = #tpu.pipeline_mode<synchronous>, transform_indices = @transform_1, window_bounds = array<i64: 32, 192>}, {pipeline_mode = #tpu.pipeline_mode<synchronous>, transform_indices = @transform_2, window_bounds = array<i64: 64, 32>}, {pipeline_mode = #tpu.pipeline_mode<synchronous>, transform_indices = @transform_3, window_bounds = array<i64: 1, 32>}, {pipeline_mode = #tpu.pipeline_mode<synchronous>, transform_indices = @transform_4, window_bounds = array<i64: 1, 32>}, {pipeline_mode = #tpu.pipeline_mode<synchronous>, transform_indices = @transform_5, window_bounds = array<i64: 1, 32>}, {pipeline_mode = #tpu.pipeline_mode<synchronous>, transform_indices = @transform_6, window_bounds = array<i64: 32, 64>}, {pipeline_mode = #tpu.pipeline_mode<synchronous>, transform_indices = @transform_7, window_bounds = array<i64: 1, 64>}, {pipeline_mode = #tpu.pipeline_mode<synchronous>, transform_indices = @transform_8, window_bounds = array<i64: 64, 32>}, {pipeline_mode = #tpu.pipeline_mode<synchronous>, transform_indices = @transform_9, window_bounds = array<i64: 1, 32>}, {pipeline_mode = #tpu.pipeline_mode<synchronous>, transform_indices = @transform_10, window_bounds = array<i64: 1, 32>}, {pipeline_mode = #tpu.pipeline_mode<synchronous>, transform_indices = @transform_11, window_bounds = array<i64: 1, 32>}, {transform_indices = @transform_12, window_bounds = array<i64: 8, 32>}, {transform_indices = @transform_13, window_bounds = array<i64: 1, 8, 8>}]} {
    %c0 = arith.constant 0 : index
    %c0_0 = arith.constant 0 : index
    %0 = vector.load %arg1[%c0, %c0_0] : memref<8x32xf32, #tpu.memory_space<vmem>>, vector<8x32xf32>
    %c0_1 = arith.constant 0 : index
    %c0_2 = arith.constant 0 : index
    %1 = vector.load %arg2[%c0_1, %c0_2] : memref<32x192xf32, #tpu.memory_space<vmem>>, vector<32x192xf32>
    %cst = arith.constant dense<0.000000e+00> : vector<8x192xf32>
    %2 = tpu.matmul %0, %1, %cst {dimension_numbers = #tpu.dot_dimension_numbers<[1], [0], [0], [1], [0, 0, 1, 1], [], []>} : vector<8x32xf32>, vector<32x192xf32>, vector<8x192xf32> -> vector<8x192xf32>
    %c0_3 = arith.constant 0 : index
    %c0_4 = arith.constant 0 : index
    %3 = vector.load %arg3[%c0_3, %c0_4] : memref<64x32xf32, #tpu.memory_space<vmem>>, vector<64x32xf32>
    %cst_5 = arith.constant 0.000000e+00 : f32
    %4 = vector.broadcast %cst_5 : f32 to vector<8x32xf32>
    %cst_6 = arith.constant 0.000000e+00 : f32
    %5 = vector.broadcast %cst_6 : f32 to vector<1x8x8xf32>
    %6 = vector.extract_strided_slice %2 {offsets = [0, 0], sizes = [8, 32], strides = [1, 1]} : vector<8x192xf32> to vector<8x32xf32>
    %7 = vector.shape_cast %6 : vector<8x32xf32> to vector<1x8x32xf32>
    %8 = vector.extract_strided_slice %2 {offsets = [0, 64], sizes = [8, 32], strides = [1, 1]} : vector<8x192xf32> to vector<8x32xf32>
    %9 = vector.shape_cast %8 : vector<8x32xf32> to vector<1x8x32xf32>
    %10 = vector.extract_strided_slice %2 {offsets = [0, 128], sizes = [8, 32], strides = [1, 1]} : vector<8x192xf32> to vector<8x32xf32>
    %11 = vector.shape_cast %10 : vector<8x32xf32> to vector<1x8x32xf32>
    "tpu.trace_start"() <{level = 10 : i32, message = "bqe,bke->bqk"}> : () -> ()
    %cst_7 = arith.constant dense<0.000000e+00> : vector<1x8x8xf32>
    %12 = tpu.matmul %7, %9, %cst_7 {dimension_numbers = #tpu.dot_dimension_numbers<[2], [2], [1], [1], [0, 0, 0, 1, 1, 1], [0], [0]>} : vector<1x8x32xf32>, vector<1x8x32xf32>, vector<1x8x8xf32> -> vector<1x8x8xf32>
    "tpu.trace_stop"() : () -> ()
    %cst_8 = arith.constant dense<0xFF800000> : vector<1x8xf32>
    %13 = vector.multi_reduction <maximumf>, %12, %cst_8 [2] : vector<1x8x8xf32> to vector<1x8xf32>
    %14 = vector.shape_cast %13 : vector<1x8xf32> to vector<1x8x1xf32>
    %15 = vector.broadcast %14 : vector<1x8x1xf32> to vector<1x8x8xf32>
    %16 = arith.subf %12, %15 : vector<1x8x8xf32>
    %17 = math.exp %16 : vector<1x8x8xf32>
    %cst_9 = arith.constant dense<0.000000e+00> : vector<1x8xf32>
    %18 = vector.multi_reduction <add>, %17, %cst_9 [2] : vector<1x8x8xf32> to vector<1x8xf32>
    %19 = vector.shape_cast %18 : vector<1x8xf32> to vector<1x8x1xf32>
    %20 = tpu.reciprocal %19 {approx = true} : vector<1x8x1xf32> -> vector<1x8x1xf32>
    %21 = vector.broadcast %20 : vector<1x8x1xf32> to vector<1x8x8xf32>
    %22 = arith.mulf %17, %21 : vector<1x8x8xf32>
    %23 = arith.addf %5, %22 : vector<1x8x8xf32>
    "tpu.trace_start"() <{level = 10 : i32, message = "bqk,bke->bqe"}> : () -> ()
    %cst_10 = arith.constant dense<0.000000e+00> : vector<1x8x32xf32>
    %24 = tpu.matmul %22, %11, %cst_10 {dimension_numbers = #tpu.dot_dimension_numbers<[2], [1], [1], [2], [0, 0, 0, 1, 1, 2], [0], [0]>} : vector<1x8x8xf32>, vector<1x8x32xf32>, vector<1x8x32xf32> -> vector<1x8x32xf32>
    "tpu.trace_stop"() : () -> ()
    %25 = vector.shape_cast %24 : vector<1x8x32xf32> to vector<8x32xf32>
    %26 = vector.extract_strided_slice %3 {offsets = [0, 0], sizes = [32, 32], strides = [1, 1]} : vector<64x32xf32> to vector<32x32xf32>
    %cst_11 = arith.constant dense<0.000000e+00> : vector<8x32xf32>
    %27 = tpu.matmul %25, %26, %cst_11 {dimension_numbers = #tpu.dot_dimension_numbers<[1], [0], [0], [1], [0, 0, 1, 1], [], []>} : vector<8x32xf32>, vector<32x32xf32>, vector<8x32xf32> -> vector<8x32xf32>
    %28 = arith.addf %4, %27 : vector<8x32xf32>
    %29 = vector.extract_strided_slice %2 {offsets = [0, 32], sizes = [8, 32], strides = [1, 1]} : vector<8x192xf32> to vector<8x32xf32>
    %30 = vector.shape_cast %29 : vector<8x32xf32> to vector<1x8x32xf32>
    %31 = vector.extract_strided_slice %2 {offsets = [0, 96], sizes = [8, 32], strides = [1, 1]} : vector<8x192xf32> to vector<8x32xf32>
    %32 = vector.shape_cast %31 : vector<8x32xf32> to vector<1x8x32xf32>
    %33 = vector.extract_strided_slice %2 {offsets = [0, 160], sizes = [8, 32], strides = [1, 1]} : vector<8x192xf32> to vector<8x32xf32>
    %34 = vector.shape_cast %33 : vector<8x32xf32> to vector<1x8x32xf32>
    "tpu.trace_start"() <{level = 10 : i32, message = "bqe,bke->bqk"}> : () -> ()
    %cst_12 = arith.constant dense<0.000000e+00> : vector<1x8x8xf32>
    %35 = tpu.matmul %30, %32, %cst_12 {dimension_numbers = #tpu.dot_dimension_numbers<[2], [2], [1], [1], [0, 0, 0, 1, 1, 1], [0], [0]>} : vector<1x8x32xf32>, vector<1x8x32xf32>, vector<1x8x8xf32> -> vector<1x8x8xf32>
    "tpu.trace_stop"() : () -> ()
    %cst_13 = arith.constant dense<0xFF800000> : vector<1x8xf32>
    %36 = vector.multi_reduction <maximumf>, %35, %cst_13 [2] : vector<1x8x8xf32> to vector<1x8xf32>
    %37 = vector.shape_cast %36 : vector<1x8xf32> to vector<1x8x1xf32>
    %38 = vector.broadcast %37 : vector<1x8x1xf32> to vector<1x8x8xf32>
    %39 = arith.subf %35, %38 : vector<1x8x8xf32>
    %40 = math.exp %39 : vector<1x8x8xf32>
    %cst_14 = arith.constant dense<0.000000e+00> : vector<1x8xf32>
    %41 = vector.multi_reduction <add>, %40, %cst_14 [2] : vector<1x8x8xf32> to vector<1x8xf32>
    %42 = vector.shape_cast %41 : vector<1x8xf32> to vector<1x8x1xf32>
    %43 = tpu.reciprocal %42 {approx = true} : vector<1x8x1xf32> -> vector<1x8x1xf32>
    %44 = vector.broadcast %43 : vector<1x8x1xf32> to vector<1x8x8xf32>
    %45 = arith.mulf %40, %44 : vector<1x8x8xf32>
    %46 = arith.addf %23, %45 : vector<1x8x8xf32>
    "tpu.trace_start"() <{level = 10 : i32, message = "bqk,bke->bqe"}> : () -> ()
    %cst_15 = arith.constant dense<0.000000e+00> : vector<1x8x32xf32>
    %47 = tpu.matmul %45, %34, %cst_15 {dimension_numbers = #tpu.dot_dimension_numbers<[2], [1], [1], [2], [0, 0, 0, 1, 1, 2], [0], [0]>} : vector<1x8x8xf32>, vector<1x8x32xf32>, vector<1x8x32xf32> -> vector<1x8x32xf32>
    "tpu.trace_stop"() : () -> ()
    %48 = vector.shape_cast %47 : vector<1x8x32xf32> to vector<8x32xf32>
    %49 = vector.extract_strided_slice %3 {offsets = [32, 0], sizes = [32, 32], strides = [1, 1]} : vector<64x32xf32> to vector<32x32xf32>
    %cst_16 = arith.constant dense<0.000000e+00> : vector<8x32xf32>
    %50 = tpu.matmul %48, %49, %cst_16 {dimension_numbers = #tpu.dot_dimension_numbers<[1], [0], [0], [1], [0, 0, 1, 1], [], []>} : vector<8x32xf32>, vector<32x32xf32>, vector<8x32xf32> -> vector<8x32xf32>
    %51 = arith.addf %28, %50 : vector<8x32xf32>
    %c0_17 = arith.constant 0 : index
    %c0_18 = arith.constant 0 : index
    %52 = vector.load %arg4[%c0_17, %c0_18] : memref<1x32xf32, #tpu.memory_space<vmem>>, vector<1x32xf32>
    %53 = vector.broadcast %52 : vector<1x32xf32> to vector<8x32xf32>
    %54 = arith.addf %51, %53 : vector<8x32xf32>
    %55 = arith.addf %54, %0 : vector<8x32xf32>
    %cst_19 = arith.constant dense<0.000000e+00> : vector<8xf32>
    %56 = vector.multi_reduction <add>, %55, %cst_19 [1] : vector<8x32xf32> to vector<8xf32>
    %57 = vector.shape_cast %56 : vector<8xf32> to vector<8x1xf32>
    %cst_20 = arith.constant 3.200000e+01 : f32
    %58 = vector.broadcast %cst_20 : f32 to vector<8x1xf32>
    %59 = arith.divf %57, %58 : vector<8x1xf32>
    %60 = vector.broadcast %59 : vector<8x1xf32> to vector<8x32xf32>
    %61 = arith.subf %55, %60 : vector<8x32xf32>
    %62 = arith.mulf %61, %61 : vector<8x32xf32>
    %cst_21 = arith.constant dense<0.000000e+00> : vector<8xf32>
    %63 = vector.multi_reduction <add>, %62, %cst_21 [1] : vector<8x32xf32> to vector<8xf32>
    %64 = vector.shape_cast %63 : vector<8xf32> to vector<8x1xf32>
    %cst_22 = arith.constant 3.200000e+01 : f32
    %65 = vector.broadcast %cst_22 : f32 to vector<8x1xf32>
    %66 = arith.divf %64, %65 : vector<8x1xf32>
    %67 = vector.broadcast %59 : vector<8x1xf32> to vector<8x32xf32>
    %68 = arith.subf %55, %67 : vector<8x32xf32>
    %cst_23 = arith.constant 9.99999974E-6 : f32
    %69 = vector.broadcast %cst_23 : f32 to vector<8x1xf32>
    %70 = arith.addf %66, %69 : vector<8x1xf32>
    %71 = math.rsqrt %70 : vector<8x1xf32>
    %72 = vector.broadcast %71 : vector<8x1xf32> to vector<8x32xf32>
    %73 = arith.mulf %68, %72 : vector<8x32xf32>
    %c0_24 = arith.constant 0 : index
    %c0_25 = arith.constant 0 : index
    %74 = vector.load %arg5[%c0_24, %c0_25] : memref<1x32xf32, #tpu.memory_space<vmem>>, vector<1x32xf32>
    %75 = vector.broadcast %74 : vector<1x32xf32> to vector<8x32xf32>
    %76 = arith.mulf %73, %75 : vector<8x32xf32>
    %c0_26 = arith.constant 0 : index
    %c0_27 = arith.constant 0 : index
    %77 = vector.load %arg6[%c0_26, %c0_27] : memref<1x32xf32, #tpu.memory_space<vmem>>, vector<1x32xf32>
    %78 = vector.broadcast %77 : vector<1x32xf32> to vector<8x32xf32>
    %79 = arith.addf %76, %78 : vector<8x32xf32>
    %c0_28 = arith.constant 0 : index
    %c0_29 = arith.constant 0 : index
    %80 = vector.load %arg7[%c0_28, %c0_29] : memref<32x64xf32, #tpu.memory_space<vmem>>, vector<32x64xf32>
    %cst_30 = arith.constant dense<0.000000e+00> : vector<8x64xf32>
    %81 = tpu.matmul %79, %80, %cst_30 {dimension_numbers = #tpu.dot_dimension_numbers<[1], [0], [0], [1], [0, 0, 1, 1], [], []>} : vector<8x32xf32>, vector<32x64xf32>, vector<8x64xf32> -> vector<8x64xf32>
    %c0_31 = arith.constant 0 : index
    %c0_32 = arith.constant 0 : index
    %82 = vector.load %arg8[%c0_31, %c0_32] : memref<1x64xf32, #tpu.memory_space<vmem>>, vector<1x64xf32>
    %83 = vector.broadcast %82 : vector<1x64xf32> to vector<8x64xf32>
    %84 = arith.addf %81, %83 : vector<8x64xf32>
    %cst_33 = arith.constant 0.000000e+00 : f32
    %85 = vector.broadcast %cst_33 : f32 to vector<8x64xf32>
    %86 = arith.maximumf %84, %85 : vector<8x64xf32>
    %c0_34 = arith.constant 0 : index
    %c0_35 = arith.constant 0 : index
    %87 = vector.load %arg9[%c0_34, %c0_35] : memref<64x32xf32, #tpu.memory_space<vmem>>, vector<64x32xf32>
    %cst_36 = arith.constant dense<0.000000e+00> : vector<8x32xf32>
    %88 = tpu.matmul %86, %87, %cst_36 {dimension_numbers = #tpu.dot_dimension_numbers<[1], [0], [0], [1], [0, 0, 1, 1], [], []>} : vector<8x64xf32>, vector<64x32xf32>, vector<8x32xf32> -> vector<8x32xf32>
    %c0_37 = arith.constant 0 : index
    %c0_38 = arith.constant 0 : index
    %89 = vector.load %arg10[%c0_37, %c0_38] : memref<1x32xf32, #tpu.memory_space<vmem>>, vector<1x32xf32>
    %90 = vector.broadcast %89 : vector<1x32xf32> to vector<8x32xf32>
    %91 = arith.addf %88, %90 : vector<8x32xf32>
    %92 = arith.addf %91, %79 : vector<8x32xf32>
    %cst_39 = arith.constant dense<0.000000e+00> : vector<8xf32>
    %93 = vector.multi_reduction <add>, %92, %cst_39 [1] : vector<8x32xf32> to vector<8xf32>
    %94 = vector.shape_cast %93 : vector<8xf32> to vector<8x1xf32>
    %cst_40 = arith.constant 3.200000e+01 : f32
    %95 = vector.broadcast %cst_40 : f32 to vector<8x1xf32>
    %96 = arith.divf %94, %95 : vector<8x1xf32>
    %97 = vector.broadcast %96 : vector<8x1xf32> to vector<8x32xf32>
    %98 = arith.subf %92, %97 : vector<8x32xf32>
    %99 = arith.mulf %98, %98 : vector<8x32xf32>
    %cst_41 = arith.constant dense<0.000000e+00> : vector<8xf32>
    %100 = vector.multi_reduction <add>, %99, %cst_41 [1] : vector<8x32xf32> to vector<8xf32>
    %101 = vector.shape_cast %100 : vector<8xf32> to vector<8x1xf32>
    %cst_42 = arith.constant 3.200000e+01 : f32
    %102 = vector.broadcast %cst_42 : f32 to vector<8x1xf32>
    %103 = arith.divf %101, %102 : vector<8x1xf32>
    %104 = vector.broadcast %96 : vector<8x1xf32> to vector<8x32xf32>
    %105 = arith.subf %92, %104 : vector<8x32xf32>
    %cst_43 = arith.constant 9.99999974E-6 : f32
    %106 = vector.broadcast %cst_43 : f32 to vector<8x1xf32>
    %107 = arith.addf %103, %106 : vector<8x1xf32>
    %108 = math.rsqrt %107 : vector<8x1xf32>
    %109 = vector.broadcast %108 : vector<8x1xf32> to vector<8x32xf32>
    %110 = arith.mulf %105, %109 : vector<8x32xf32>
    %c0_44 = arith.constant 0 : index
    %c0_45 = arith.constant 0 : index
    %111 = vector.load %arg11[%c0_44, %c0_45] : memref<1x32xf32, #tpu.memory_space<vmem>>, vector<1x32xf32>
    %112 = vector.broadcast %111 : vector<1x32xf32> to vector<8x32xf32>
    %113 = arith.mulf %110, %112 : vector<8x32xf32>
    %c0_46 = arith.constant 0 : index
    %c0_47 = arith.constant 0 : index
    %114 = vector.load %arg12[%c0_46, %c0_47] : memref<1x32xf32, #tpu.memory_space<vmem>>, vector<1x32xf32>
    %115 = vector.broadcast %114 : vector<1x32xf32> to vector<8x32xf32>
    %116 = arith.addf %113, %115 : vector<8x32xf32>
    %c0_48 = arith.constant 0 : index
    %c0_49 = arith.constant 0 : index
    %117 = vector.load %arg13[%c0_48, %c0_49] : memref<8x32xf32, #tpu.memory_space<vmem>>, vector<8x32xf32>
    tpu.vector_store %arg13[%c0_48, %c0_49], %116 {strides = array<i32>} : memref<8x32xf32, #tpu.memory_space<vmem>>, vector<8x32xf32>,
    %cst_50 = arith.constant 5.000000e-01 : f32
    %118 = vector.broadcast %cst_50 : f32 to vector<1x8x8xf32>
    %119 = arith.mulf %46, %118 : vector<1x8x8xf32>
    %c0_51 = arith.constant 0 : index
    %c0_52 = arith.constant 0 : index
    %c0_53 = arith.constant 0 : index
    %120 = vector.load %arg14[%c0_51, %c0_52, %c0_53] : memref<1x8x8xf32, #tpu.memory_space<vmem>>, vector<1x8x8xf32>
    tpu.vector_store %arg14[%c0_51, %c0_52, %c0_53], %119 {strides = array<i32>} : memref<1x8x8xf32, #tpu.memory_space<vmem>>, vector<1x8x8xf32>,
    return
  }
  func.func @transform_0(%arg0: i32) -> (i32, i32) {
    %c0_i32 = arith.constant 0 : i32
    %c0_i32_0 = arith.constant 0 : i32
    return %arg0, %c0_i32 : i32, i32
  }
  func.func @transform_1(%arg0: i32) -> (i32, i32) {
    %c0_i32 = arith.constant 0 : i32
    %c0_i32_0 = arith.constant 0 : i32
    %c0_i32_1 = arith.constant 0 : i32
    return %c0_i32, %c0_i32_0 : i32, i32
  }
  func.func @transform_2(%arg0: i32) -> (i32, i32) {
    %c0_i32 = arith.constant 0 : i32
    %c0_i32_0 = arith.constant 0 : i32
    %c0_i32_1 = arith.constant 0 : i32
    return %c0_i32, %c0_i32_0 : i32, i32
  }
  func.func @transform_3(%arg0: i32) -> (i32, i32) {
    %c0_i32 = arith.constant 0 : i32
    %c0_i32_0 = arith.constant 0 : i32
    %c0_i32_1 = arith.constant 0 : i32
    return %c0_i32, %c0_i32_0 : i32, i32
  }
  func.func @transform_4(%arg0: i32) -> (i32, i32) {
    %c0_i32 = arith.constant 0 : i32
    %c0_i32_0 = arith.constant 0 : i32
    %c0_i32_1 = arith.constant 0 : i32
    return %c0_i32, %c0_i32_0 : i32, i32
  }
  func.func @transform_5(%arg0: i32) -> (i32, i32) {
    %c0_i32 = arith.constant 0 : i32
    %c0_i32_0 = arith.constant 0 : i32
    %c0_i32_1 = arith.constant 0 : i32
    return %c0_i32, %c0_i32_0 : i32, i32
  }
  func.func @transform_6(%arg0: i32) -> (i32, i32) {
    %c0_i32 = arith.constant 0 : i32
    %c0_i32_0 = arith.constant 0 : i32
    %c0_i32_1 = arith.constant 0 : i32
    return %c0_i32, %c0_i32_0 : i32, i32
  }
  func.func @transform_7(%arg0: i32) -> (i32, i32) {
    %c0_i32 = arith.constant 0 : i32
    %c0_i32_0 = arith.constant 0 : i32
    %c0_i32_1 = arith.constant 0 : i32
    return %c0_i32, %c0_i32_0 : i32, i32
  }
  func.func @transform_8(%arg0: i32) -> (i32, i32) {
    %c0_i32 = arith.constant 0 : i32
    %c0_i32_0 = arith.constant 0 : i32
    %c0_i32_1 = arith.constant 0 : i32
    return %c0_i32, %c0_i32_0 : i32, i32
  }
  func.func @transform_9(%arg0: i32) -> (i32, i32) {
    %c0_i32 = arith.constant 0 : i32
    %c0_i32_0 = arith.constant 0 : i32
    %c0_i32_1 = arith.constant 0 : i32
    return %c0_i32, %c0_i32_0 : i32, i32
  }
  func.func @transform_10(%arg0: i32) -> (i32, i32) {
    %c0_i32 = arith.constant 0 : i32
    %c0_i32_0 = arith.constant 0 : i32
    %c0_i32_1 = arith.constant 0 : i32
    return %c0_i32, %c0_i32_0 : i32, i32
  }
  func.func @transform_11(%arg0: i32) -> (i32, i32) {
    %c0_i32 = arith.constant 0 : i32
    %c0_i32_0 = arith.constant 0 : i32
    %c0_i32_1 = arith.constant 0 : i32
    return %c0_i32, %c0_i32_0 : i32, i32
  }
  func.func @transform_12(%arg0: i32) -> (i32, i32) {
    %c0_i32 = arith.constant 0 : i32
    %c0_i32_0 = arith.constant 0 : i32
    return %arg0, %c0_i32 : i32, i32
  }
  func.func @transform_13(%arg0: i32) -> (i32, i32, i32) {
    %c0_i32 = arith.constant 0 : i32
    %c0_i32_0 = arith.constant 0 : i32
    %c0_i32_1 = arith.constant 0 : i32
    return %arg0, %c0_i32, %c0_i32_0 : i32, i32, i32
  }
}

</mosaic_0001>

<bundles_post_ra>
// kernel: tpu_custom_call.1
= control target key start
LH: loop header
LB: loop body
LE: loop exit
PB: predicated region body
PF: predicated region fallthrough
CT: control target
= control target key end

     0   :  { %s2094_s0 = inlined_call_operand.vmem [shape: f32[16,32], index: 0, kind: input, shape index: {}]   ;;  %s2095_s1 = inlined_call_operand.vmem [shape: f32[32,192], index: 1, kind: input, shape index: {}]   ;;  %s2096_s2 = inlined_call_operand.vmem [shape: f32[64,32], index: 2, kind: input, shape index: {}]   ;;  %s2097_s3 = inlined_call_operand.vmem [shape: f32[1,32], index: 3, kind: input, shape index: {}]   ;;  %s2098_s4 = inlined_call_operand.vmem [shape: f32[1,32], index: 4, kind: input, shape index: {}]   ;;  %s2099_s5 = inlined_call_operand.vmem [shape: f32[1,32], index: 5, kind: input, shape index: {}]   ;;  %s2100_s6 = inlined_call_operand.vmem [shape: f32[32,64], index: 6, kind: input, shape index: {}]   ;;  %s2101_s7 = inlined_call_operand.vmem [shape: f32[1,64], index: 7, kind: input, shape index: {}]   ;;  %s2102_s8 = inlined_call_operand.vmem [shape: f32[64,32], index: 8, kind: input, shape index: {}]   ;;  %s2103_s9 = inlined_call_operand.vmem [shape: f32[1,32], index: 9, kind: input, shape index: {}]   ;;  %s2104_s10 = inlined_call_operand.vmem [shape: f32[1,32], index: 10, kind: input, shape index: {}]   ;;  %s2105_s11 = inlined_call_operand.vmem [shape: f32[1,32], index: 11, kind: input, shape index: {}]   ;;  %s2106_s12 = inlined_call_operand.hbm [shape: f32[16,32], index: 12, kind: output, shape index: {0}]   ;;  %s2107_s13 = inlined_call_operand.hbm [shape: f32[2,8,8], index: 13, kind: output, shape index: {1}]  }
   0x1   :  { %2111 = sst [smem:[#allocation10_spill]] %s2094_s0 }
   0x2   :  { %2112 = sst [smem:[#allocation11_spill]] %s2095_s1 }
   0x3   :  { %19 = vsyncpa [#allocation3], 0 }
   0x4   :  { %21 = vsyncpa [#allocation3 + $0x1], 0 }
   0x5   :  { %22 = vsyncpa [#allocation5], 0 }
   0x6   :  { %24 = vsyncpa [#allocation5 + $0x1], 0  ;;  %s1793_s25 = smov 0   ;;  %s1795_s26 = smov 0  }
   0x7   :  { %s1797_s27 = smov 0   ;;  %s1799_s28 = smov 0  }
   0x8 LB: > { %2113 = sst [smem:[#allocation8_spill]] %s1709_s27  ;;  %s1814_s29 = sadd.s32 4294967295, %s1713_s28   ;;  %s1713_s28 = sphi %s1799_s28, %s2125_s28   ;;  %s1709_s27 = sphi %s1797_s27, %s2122_s27   ;;  %s1705_s26 = sphi %s1795_s26, %s2124_s26   ;;  %s1701_s25 = sphi %s1793_s25, %s2123_s25  }
   0x9   : > { %s1384_s30 = sadd.s32 4294967294, %s1713_s28   ;;  %s1818_s14 = sadd.s32 1, %s1713_s28  }
   0xa   : > { %s294_s15 = sadd.s32 1, %s1709_s27  ;;  %s291_s16 = ssub.s32 %s1713_s28, %s1818_s14 }
   0xb   : > { %p304_p0 = scmp.ne.s32.totalorder %s1709_s27, %s1705_s26  ;;  %p292_p1 = scmp.eq.s32.totalorder %s291_s16, 0 }
   0xc   : > { %p305_p2 = scmp.eq.s32.totalorder %s1814_s29, 1  ;;  %p310_p3 = scmp.ne.s32.totalorder %s1705_s26, %s1701_s25 }
   0xd   : > { %p311_p4 = scmp.eq.s32.totalorder %s1384_s30, 1  ;;  %p1387_p7 = scmp.ge.s32.totalorder %s1713_s28, 1 }
   0xe   : > { %s1829_s17 = scalar_select %p292_p1, %s1709_s27, %s294_s15  }
   0xf   : > { %p1831_p5 = por %p305_p2, %p304_p0  ;;  %p1835_p6 = por %p311_p4, %p310_p3 }
  0x10   : > { %2114 = sst [smem:[#allocation9_spill]] %s1829_s17  ;;  %p395_p8 = scmp.lt.s32.totalorder %s1713_s28, 3 }
  0x12   : > { %p396_p9 = pnand %p1387_p7, %p395_p8 }
  0x13   : > { %s2117_s1 = sld [smem:[#allocation11_spill]] (!%p396_p9)  ;;  %p443_p10 = scmp.lt.s32.totalorder (!%p396_p9), %s1814_s29, 1  ;;  %v1715_v7 = vmov (!%p396_p9), 0.0   ;;  %vm456_vm0 = vcmask (!%p396_p9), 261120   ;;  %vm1716_vm1 = vmmov (!%p396_p9), 0   ;;  %vm616_vm2 = vcmask (!%p396_p9), 64512  }
  0x14   : > { %399 = sbr.rel (%p396_p9) target bundleno = 2398 (0x95e), region = 68  ;;  %524 = vmatprep.mubr.f32.mxu0 (!%p396_p9), %v1715_v7  ;;  %1452 = vmatprep.subr.mxu1 (!%p396_p9), %v1715_v7  ;;  %s2118_s0 = sld [smem:[#allocation10_spill]] (!%p396_p9)  ;;  %v1720_v35 = vmov (!%p396_p9), 0.0|0.0   ;;  %v535_v36 = vld [vmem:[%s2096_s2 + $0x20] sm:$0xff] (!%p396_p9)  ;;  %v536_v37 = vld [vmem:[%s2096_s2 + $0x28] sm:$0xff] (!%p396_p9)  ;;  %v533_v49 = vld [vmem:[%s2096_s2 + $0x10] sm:$0xff] (!%p396_p9) }
  0x15   : > { %1454 = vmatprep.mubr.msk.f32.mxu1 (!%p396_p9), %vm1716_vm1, %v1715_v7  ;;  %s1717_s21 = smov (!%p396_p9), 96   ;;  %s1718_s22 = smov (!%p396_p9), 64   ;;  %v1528_v38 = vpack.c.bf16 (!%p396_p9), %v536_v37, %v535_v36  ;;  %v531_v43 = vld [vmem:[%s2096_s2] sm:$0xff] (!%p396_p9)  ;;  %v532_v44 = vld [vmem:[%s2096_s2 + $0x8] sm:$0xff] (!%p396_p9)  ;;  %v534_v50 = vld [vmem:[%s2096_s2 + $0x18] sm:$0xff] (!%p396_p9)  ;;  %vm1154_vm3 = vcmask (!%p396_p9), 523264  }
  0x16   : > { %s1719_s23 = smov (!%p396_p9), 32   ;;  %v1534_v47 = vpack.c.bf16 (!%p396_p9), %v532_v44, %v531_v43  ;;  %v1537_v52 = vpack.c.bf16 (!%p396_p9), %v534_v50, %v533_v49  ;;  %v537_v54 = vld [vmem:[%s2096_s2 + $0x30] sm:$0xff] (!%p396_p9)  ;;  %v538_v55 = vld [vmem:[%s2096_s2 + $0x38] sm:$0xff] (!%p396_p9)  ;;  %v1405_v43 = vld [vmem:[%s2103_s9] ss:$0 sm:$0xff] (!%p396_p9)  ;;  %s1721_s16 = smov (!%p396_p9), [#allocation4]  }
  0x17   : > { %v1531_v56 = vpack.c.bf16 (!%p396_p9), %v538_v55, %v537_v54  ;;  %v1146_v36 = vld [vmem:[%s2102_s8 + $0x38] sm:$0xff] (!%p396_p9) }
  0x19   : > { %v449_v0 = vld [vmem:[%s2117_s1 + $0x8] sm:$0xff] (!%p396_p9)  ;;  %v451_v1 = vld [vmem:[%s2117_s1 + $0x18] sm:$0xff] (!%p396_p9)  ;;  %v448_v2 = vld [vmem:[%s2117_s1] sm:$0xff] (!%p396_p9) }
  0x1a   : > { %v1519_v3 = vpack.c.bf16 (!%p396_p9), %v451_v1, %v449_v0  ;;  %v450_v4 = vld [vmem:[%s2117_s1 + $0x10] sm:$0xff] (!%p396_p9)  ;;  %v453_v5 = vld [vmem:[%s2117_s1 + $0x28] sm:$0xff] (!%p396_p9)  ;;  %v455_v6 = vld [vmem:[%s2117_s1 + $0x38] sm:$0xff] (!%p396_p9) }
  0x1b   : > { %v1521_v8 = vpack.c.bf16 %v450_v4, %v448_v2  ;;  %v1523_v9 = vpack.c.bf16 %v455_v6, %v453_v5  ;;  %v452_v10 = vld [vmem:[%s2117_s1 + $0x20] sm:$0xff]  ;;  %v454_v11 = vld [vmem:[%s2117_s1 + $0x30] sm:$0xff]  ;;  %s444_s27 = scalar_select %p443_p10, %s1814_s29, 1 }
  0x1c   : > { %1520 = vmatprep.subr.bf16.mxu0 %v1519_v3  ;;  %v1525_v12 = vpack.c.bf16 %v454_v11, %v452_v10  ;;  %v1400_v0 = vld [vmem:[%s2097_s3] ss:$0 sm:$0xff] }
  0x1d   : > { %1522 = vmatpush1.bf16.msra.mxu0 %v1521_v8  ;;  %s1390_s17 = sshll.u32 %s444_s27, 3  ;;  %v1054_v11 = vld [vmem:[%s2100_s6] sm:$0xff] }
  0x1e   : > { %1524 = vmatprep.subr.bf16.mxu0 %v1523_v9  ;;  %s446_s20 = scalar_lea.vmem %s2118_s0, %s1390_s17  ;;  %s1623_s0 = sshll.u32 %s1721_s16, 4  ;;  %s1624_s0 = int_to_ptr.vmem [resolvable:$false] %s1623_s0 }
  0x1f   : > { %v1872_v13 = vld [vmem:[%s446_s20] sm:$0xff]  ;;  %s2110_s20 = sshll.u32 %s1814_s29, 7  ;;  %s1625_s1 = scalar_lea.vmem %s1624_s0, 256 }
  0x21   : > { %1526 = vmatpush1.bf16.msra.mxu0 %v1525_v12  ;;  %v1055_v12 = vld [vmem:[%s2100_s6 + $0x8] sm:$0xff] }
  0x22   : > { %1447 = vmatprep.subr.mxu0 %v1715_v7 }
  0x24   : > { %1391 = vmatmul.mubr.msk.f32.vlgmr.msra.gmra.mrb[0].mxu0 %vm456_vm0, %v1872_v13 }
  0x25   : > { %1449 = vmatprep.mubr.msk.f32.mxu0 %vm1716_vm1, %v1715_v7 }
  0xf7   : > { %v526_v14 = vpop.f32.mrb[0].mxu0 }
  0xf8   : > { %702 = vrot.lane.b32.xlu1 %v526_v14, %s1717_s21  ;;  %540 = vrot.lane.b32.xlu0 %v526_v14, %s1718_s22  ;;  %v528_v15 = vpop.f32.mrb[1].mxu0  ;;  %s1912_s22 = sand.u32 1, %s1705_s26  }
  0xf9   : > { %1453 = vmatpush3.msra.mxu1 %v528_v15  ;;  %s2109_s17 = sshll.u32 %s1912_s22, 3  ;;  %s1267_s30 = scalar_lea.sflag [#allocation5], %s1912_s22 }
  0xfa   : > { %1462 = vmatprep.subr.mxu1 %v1715_v7  ;;  %s1931_s15 = scalar_lea.vmem [#allocation4], %s2109_s17  ;;  %s2016_s17 = scalar_lea.hbm %s2107_s13, %s2110_s20 }
  0xfb   : > { %s1293_s24 = sshll.u32 %s1931_s15, 4  ;;  %s1294_s24 = int_to_ptr.vmem [resolvable:$true] %s1293_s24 }
  0xfc   : > { %704 = vrot.lane.b32.xlu0 %v526_v14, %s1719_s23  ;;  %s1619_s27 = scalar_lea.vmem %s1294_s24, 128  ;;  %p1626_p0 = scmp.lt.s32.totalorder %s1294_s24, %s1624_s0 }
  0xfd   : > { %p1620_p11 = scmp.ne.s32.totalorder %s1294_s24, %s1619_s27  ;;  %p1627_p1 = scmp.lt.s32.totalorder %s1625_s1, %s1619_s27 }
  0xff   : > { %p1621_p12 = pnand %p1620_p11, %p1831_p5  ;;  %p1628_p2 = por %p1627_p1, %p1626_p0 }
 0x101   : > { %p1622_p13 = pneg %p1621_p12 }
 0x103   : > { %p1629_p3 = pnand %p1628_p2, %p1622_p13 }
 0x16a   : > { %v541_v16 = vpop.permute.xlu0 %540  ;;  %v703_v18 = vpop.permute.xlu1 %702 }
 0x16b   : > { %1448 = vmatpush3.xpose.msk.msra.mxu0 %vm456_vm0, %v541_v16 }
 0x16c   : > { %1457 = vmatprep.subr.mxu0 %v1715_v7 }
 0x16e   : > { %1450 = vmatmul.mubr.msk.f32.vlgmr.msra.gmra.mrb[2].mxu0 %vm456_vm0, %v526_v14  ;;  %v705_v17 = vpop.permute.xlu0 %704  ;;  %v1540_v14 = vpack.c.bf16 %v1055_v12, %v1054_v11 }
 0x16f   : > { %1458 = vmatpush3.xpose.msk.msra.mxu0 %vm456_vm0, %v705_v17  ;;  %1459 = vmatprep.mubr.msk.f32.mxu0 %vm1716_vm1, %v1715_v7  ;;  %v1139_v17 = vld [vmem:[%s2102_s8] sm:$0xff] }
 0x170   : > { %1527 = vmatprep.subr.bf16.mxu0 %v1720_v35 }
 0x172   : > { %1460 = vmatmul.mubr.msk.f32.vlgmr.msra.gmra.mrb[4].mxu0 %vm456_vm0, %v703_v18  ;;  %v1140_v18 = vld [vmem:[%s2102_s8 + $0x8] sm:$0xff] }
 0x173   : > { %1475 = vmatprep.mubr.msk.f32.mxu0 %vm1716_vm1, %v1715_v7  ;;  %1529 = vmatpush3.bf16.msra.mxu0 %v1528_v38  ;;  %v1403_v38 = vld [vmem:[%s2101_s7] ss:$0 sm:$0xff] }
 0x174   : > { %1530 = vmatprep.subr.bf16.mxu0 %v1720_v35 }
 0x177   : > { %1532 = vmatpush3.bf16.msra.mxu0 %v1531_v56 }
 0x178   : > { %1539 = vmatprep.subr.bf16.mxu0 %v1720_v35 }
 0x241   : > { %v612_v19 = vpop.f32.mrb[2].mxu0 }
 0x242   : > { %v1451_v20 = vpop.f32.mrb[3].mxu0  ;;  %v617_v21 = vsel %vm616_vm2, %v612_v19, -inf }
 0x243   : > { %618 = vmax.xlane.f32.xlu1 %v617_v21  ;;  %v1546_v20 = vpack.c.bf16 %v1140_v18, %v1139_v17  ;;  %v1142_v21 = vld [vmem:[%s2102_s8 + $0x18] sm:$0xff] }
 0x245   : > { %v776_v22 = vpop.f32.mrb[4].mxu0 }
 0x246   : > { %v1461_v23 = vpop.f32.mrb[5].mxu0  ;;  %v780_v24 = vsel %vm616_vm2, %v776_v22, -inf }
 0x247   : > { %781 = vmax.xlane.f32.xlu0 %v780_v24  ;;  %v1143_v23 = vld [vmem:[%s2102_s8 + $0x20] sm:$0xff]  ;;  %v1144_v24 = vld [vmem:[%s2102_s8 + $0x28] sm:$0xff] }
 0x2d0   : > { %v619_v25 = vpop.xlane.xlu1 %618 }
 0x2d1   : > { %v620_v26 = vsub.f32 %v612_v19, %v619_v25  ;;  %v1141_v19 = vld [vmem:[%s2102_s8 + $0x10] sm:$0xff]  ;;  %v1552_v25 = vpack.c.bf16 %v1144_v24, %v1143_v23 }
 0x2d3   : > { %v621_v27 = vmul.f32 1.442695, %v620_v26 }
 0x2d4   : > { %v782_v28 = vpop.xlane.xlu0 %781 }
 0x2d5   : > { %1607 = vpow2.f32 %v621_v27  ;;  %v783_v29 = vsub.f32 %v776_v22, %v782_v28  ;;  %v1549_v22 = vpack.c.bf16 %v1142_v21, %v1141_v19 }
 0x2d7   : > { %v784_v30 = vmul.f32 1.442695, %v783_v29 }
 0x2d9   : > { %1609 = vpow2.f32 %v784_v30  ;;  %v1401_v30 = vld [vmem:[%s2098_s4] ss:$0 sm:$0xff] }
 0x2df   : > { %v1608_v31 = vpop.eup %1607 }
 0x2e0   : > { %v623_v32 = vsel %vm616_vm2, %v1608_v31, 0.0 }
 0x2e1   : > { %624 = vadd.xlane.f32.xlu0 %v623_v32  ;;  %v1402_v32 = vld [vmem:[%s2099_s5] ss:$0 sm:$0xff] }
 0x2e3   : > { %v1610_v33 = vpop.eup %1609 }
 0x2e4   : > { %v786_v34 = vsel %vm616_vm2, %v1610_v33, 0.0 }
 0x2e5   : > { %787 = vadd.xlane.f32.xlu1 %v786_v34 }
 0x2f7   : > { %793 = vrot.lane.b32.xlu0 %v528_v15, %s1717_s21  ;;  %v1057_v15 = vld [vmem:[%s2100_s6 + $0x18] sm:$0xff] }
 0x36e   : > { %v625_v39 = vpop.xlane.xlu0 %624 }
 0x36f   : > { %1611 = vrcp.f32 %v625_v39 }
 0x372   : > { %v788_v40 = vpop.xlane.xlu1 %787  ;;  %v794_v45 = vpop.permute.xlu0 %793 }
 0x373   : > { %1613 = vrcp.f32 %v788_v40 }
 0x379   : > { %v1612_v41 = vpop.eup %1611 }
 0x37a   : > { %v627_v42 = vmul.f32 %v1612_v41, %v1608_v31 }
 0x37c   : > { %1455 = vmatmul.mubr.msk.f32.vlgmr.msra.gmra.mrb[0].mxu1 %vm616_vm2, %v627_v42 }
 0x37d   : > { %v1614_v46 = vpop.eup %1613  ;;  %1463 = vmatpush3.msra.mxu1 %v794_v45  ;;  %1464 = vmatprep.mubr.msk.f32.mxu1 %vm1716_vm1, %v1715_v7 }
 0x37e   : > { %v790_v48 = vmul.f32 %v1614_v46, %v1610_v33  ;;  %1533 = vmatprep.subr.bf16.mxu1 %v1720_v35 }
 0x380   : > { %1465 = vmatmul.mubr.msk.f32.vlgmr.msra.gmra.mrb[2].mxu1 %vm616_vm2, %v790_v48  ;;  %v791_v51 = vadd.f32 %v790_v48, %v627_v42 }
 0x381   : > { %1535 = vmatpush3.bf16.msra.mxu1 %v1534_v47  ;;  %1486 = vmatprep.mubr.msk.f32.mxu1 %vm1716_vm1, %v1715_v7 }
 0x382   : > { %1536 = vmatprep.subr.bf16.mxu1 %v1720_v35  ;;  %v1259_v53 = vmul.f32 0.5, %v791_v51 }
 0x384   : > { %1260 = vst.msk [vmem:[%s1931_s15] sm:$0xff] %vm616_vm2, %v1259_v53 }
 0x385   : > { %1538 = vmatpush3.bf16.msra.mxu1 %v1537_v52 }
 0x386   : > { %1545 = vmatprep.subr.bf16.mxu1 %v1720_v35 }
 0x44f   : > { %v698_v57 = vpop.f32.mrb[0].mxu1 }
 0x450   : > { %v1456_v58 = vpop.f32.mrb[1].mxu1  ;;  %1487 = vmatmul.mubr.msk.f32.vlgmr.msra.gmra.mrb[4].mxu1 %vm456_vm0, %v698_v57 }
 0x451   : > { %1516 = vmatprep.mubr.msk.f32.mxu1 %vm1716_vm1, %v1715_v7  ;;  %1547 = vmatpush3.bf16.msra.mxu1 %v1546_v20 }
 0x452   : > { %1548 = vmatprep.subr.bf16.mxu1 %v1720_v35 }
 0x453   : > { %v865_v59 = vpop.f32.mrb[2].mxu1 }
 0x454   : > { %v1466_v60 = vpop.f32.mrb[3].mxu1  ;;  %1476 = vmatmul.mubr.msk.f32.vlgmr.msra.gmra.mrb[6].mxu0 %vm456_vm0, %v865_v59 }
 0x455   : > { %1497 = vmatprep.mubr.msk.f32.mxu0 %vm1716_vm1, %v1715_v7  ;;  %1541 = vmatpush3.bf16.msra.mxu0 %v1540_v14 }
 0x456   : > { %1542 = vmatprep.subr.bf16.mxu0 %v1720_v35  ;;  %1550 = vmatpush3.bf16.msra.mxu1 %v1549_v22 }
 0x457   : > { %1551 = vmatprep.subr.bf16.mxu1 %v1720_v35 }
 0x45a   : > { %1553 = vmatpush3.bf16.msra.mxu1 %v1552_v25 }
 0x45b   : > { %1554 = vmatprep.subr.bf16.mxu1 %v1720_v35  ;;  %v1145_v35 = vld [vmem:[%s2102_s8 + $0x30] sm:$0xff] }
 0x45c   : > { %v1555_v37 = vpack.c.bf16 %v1146_v36, %v1145_v35 }
 0x45e   : > { %1556 = vmatpush3.bf16.msra.mxu1 %v1555_v37 }
 0x523   : > { %v1011_v61 = vpop.f32.mrb[4].mxu1 }
 0x524   : > { %v1488_v62 = vpop.f32.mrb[5].mxu1 }
 0x527   : > { %v938_v63 = vpop.f32.mrb[6].mxu0 }
 0x528   : > { %v1012_v1 = vadd.f32 %v1011_v61, %v938_v63  ;;  %v1477_v2 = vpop.f32.mrb[7].mxu0 }
 0x52a   : > { %v1022_v3 = vadd.f32 %v1400_v0, %v1012_v1 }
 0x52c   : > { %v1023_v4 = vadd.f32 %v1022_v3, %v1872_v13  ;;  %v1056_v13 = vld [vmem:[%s2100_s6 + $0x10] sm:$0xff] }
 0x52d   : > { %v1543_v16 = vpack.c.bf16 %v1057_v15, %v1056_v13 }
 0x52e   : > { %v1024_v5 = vsel %vm456_vm0, %v1023_v4, 0.0 }
 0x52f   : > { %1025 = vadd.xlane.f32.xlu1 %v1024_v5  ;;  %1544 = vmatpush3.bf16.msra.mxu0 %v1543_v16 }
 0x5bc   : > { %v1026_v6 = vpop.xlane.xlu1 %1025 }
 0x5bd   : > { %v1028_v8 = vmul.f32 0.03125, %v1026_v6 }
 0x5bf   : > { %v1029_v9 = vsub.f32 %v1023_v4, %v1028_v8 }
 0x5c1   : > { %v1030_v10 = vmul.f32 %v1029_v9, %v1029_v9 }
 0x5c3   : > { %v1031_v7 = vsel %vm456_vm0, %v1030_v10, 0.0 }
 0x5c4   : > { %1032 = vadd.xlane.f32.xlu1 %v1031_v7 }
 0x651   : > { %v1033_v26 = vpop.xlane.xlu1 %1032 }
 0x652   : > { %v1034_v27 = vmul.f32 0.03125, %v1033_v26 }
 0x654   : > { %v1035_v28 = vadd.f32 1e-05, %v1034_v27 }
 0x656   : > { %1615 = vrsqrt.f32 %v1035_v28 }
 0x660   : > { %v1616_v29 = vpop.eup %1615 }
 0x661   : > { %v1037_v31 = vmul.f32 %v1616_v29, %v1029_v9 }
 0x663   : > { %v1045_v33 = vmul.f32 %v1401_v30, %v1037_v31 }
 0x665   : > { %v1053_v34 = vadd.f32 %v1402_v32, %v1045_v33 }
 0x667   : > { %1498 = vmatmul.mubr.msk.f32.vlgmr.msra.gmra.mrb[8].mxu0 %vm456_vm0, %v1053_v34 }
 0x73a   : > { %v1134_v39 = vpop.f32.mrb[8].mxu0 }
 0x73b   : > { %v1135_v40 = vadd.f32 %v1403_v38, %v1134_v39  ;;  %v1499_v41 = vpop.f32.mrb[9].mxu0 }
 0x73d   : > { %v1138_v42 = vmax.f32 %v1135_v40, 0.0 }
 0x73f   : > { %1517 = vmatmul.mubr.msk.f32.vlgmr.msra.gmra.mrb[6].mxu1 %vm1154_vm3, %v1138_v42 }
 0x812   : > { %v1224_v44 = vpop.f32.mrb[6].mxu1 }
 0x813   : > { %v1225_v45 = vadd.f32 %v1405_v43, %v1224_v44  ;;  %v1518_v46 = vpop.f32.mrb[7].mxu1 }
 0x815   : > { %v1228_v47 = vadd.f32 %v1225_v45, %v1053_v34 }
 0x817   : > { %v1229_v48 = vsel %vm456_vm0, %v1228_v47, 0.0 }
 0x818   : > { %1230 = vadd.xlane.f32.xlu1 %v1229_v48 }
 0x8a5   : > { %v1231_v49 = vpop.xlane.xlu1 %1230 }
 0x8a6   : > { %v1232_v50 = vmul.f32 0.03125, %v1231_v49 }
 0x8a8   : > { %v1233_v51 = vsub.f32 %v1228_v47, %v1232_v50 }
 0x8aa   : > { %v1234_v52 = vmul.f32 %v1233_v51, %v1233_v51 }
 0x8ac   : > { %v1235_v53 = vsel %vm456_vm0, %v1234_v52, 0.0 }
 0x8ad   : > { %1236 = vadd.xlane.f32.xlu1 %v1235_v53 }
 0x8ae   : > { %1632 = shalt.err (!%p1629_p3)
}
 0x8af   : > { %s1633_s15 = scalar_lea.hbm %s2016_s17, 128  ;;  %s1637_s16 = scalar_lea.hbm %s2107_s13, 256 }
 0x8b0   : > { %p1634_p4 = scmp.ne.s32.totalorder %s2016_s17, %s1633_s15  ;;  %p1638_p9 = scmp.lt.u32.totalorder %s2016_s17, %s2107_s13 }
 0x8b1   : > { %p1639_p10 = scmp.lt.u32.totalorder %s1637_s16, %s1633_s15  ;;  %p1641_p12 = scmp.lt.u32.totalorder %s1633_s15, %s2016_s17 }
 0x8b2   : > { %p1635_p7 = pnand %p1634_p4, %p1831_p5 }
 0x8b3   : > { %p1640_p11 = por %p1639_p10, %p1638_p9 }
 0x8b4   : > { %p1636_p8 = pneg %p1635_p7 }
 0x8b5   : > { %p1642_p13 = por %p1641_p12, %p1640_p11 }
 0x8b7   : > { %p1643_p0 = pnand %p1642_p13, %p1636_p8 }
 0x8b9   : > { %1646 = shalt.err (!%p1643_p0)
}
 0x8ba   : > { %1558 = dma.vmem_to_hbm [thread:$0]  (%p1831_p5), %s1294_s24, 128, %s2016_s17, %s1267_s30   ;;  %v1407_v58 = vld [vmem:[%s2104_s10] ss:$0 sm:$0xff] }
 0x8bb   : > { %v1408_v60 = vld [vmem:[%s2105_s11] ss:$0 sm:$0xff]  ;;  %s2119_s21 = sshll.u32 %s1912_s22, 3  ;;  %s2120_s17 = sshll.u32 %s1814_s29, 7 }
 0x8bc   : > { %s435_s23 = scalar_lea.vmem [#allocation2], %s2119_s21  ;;  %s2050_s0 = scalar_lea.hbm %s2106_s12, %s2120_s17 }
 0x8bd   : > { %s1280_s16 = sshll.u32 %s435_s23, 4  ;;  %s1262_s20 = scalar_lea.sflag [#allocation3], %s1912_s22  ;;  %s2052_s16 = int_to_ptr.vmem [resolvable:$true] %s1280_s16 }
 0x8be   : > { %s1647_s27 = scalar_lea.vmem %s2052_s16, 128  ;;  %s1722_s1 = smov [#allocation2]  }
 0x8bf   : > { %p1648_p1 = scmp.ne.s32.totalorder %s2052_s16, %s1647_s27  ;;  %s1651_s29 = sshll.u32 %s1722_s1, 4  ;;  %s1652_s29 = int_to_ptr.vmem [resolvable:$false] %s1651_s29 }
 0x8c0   : > { %s1653_s15 = scalar_lea.vmem %s1652_s29, 256  ;;  %p1654_p4 = scmp.lt.s32.totalorder %s2052_s16, %s1652_s29 }
 0x8c1   : > { %p1649_p2 = pnand %p1648_p1, %p1831_p5  ;;  %p1655_p7 = scmp.lt.s32.totalorder %s1653_s15, %s1647_s27 }
 0x8c3   : > { %p1650_p3 = pneg %p1649_p2  ;;  %p1656_p8 = por %p1655_p7, %p1654_p4 }
 0x8c5   : > { %p1657_p9 = pnand %p1656_p8, %p1650_p3 }
 0x93a   : > { %v1237_v54 = vpop.xlane.xlu1 %1236 }
 0x93b   : > { %v1238_v55 = vmul.f32 0.03125, %v1237_v54 }
 0x93d   : > { %v1239_v56 = vadd.f32 1e-05, %v1238_v55 }
 0x93f   : > { %1617 = vrsqrt.f32 %v1239_v56 }
 0x949   : > { %v1618_v57 = vpop.eup %1617 }
 0x94a   : > { %v1241_v59 = vmul.f32 %v1618_v57, %v1233_v51 }
 0x94c   : > { %v1249_v61 = vmul.f32 %v1407_v58, %v1241_v59 }
 0x94e   : > { %v1257_v62 = vadd.f32 %v1408_v60, %v1249_v61 }
 0x950   : > { %1258 = vst.msk [vmem:[%s435_s23] sm:$0xff] %vm456_vm0, %v1257_v62 }
 0x951   : > { %1660 = shalt.err (!%p1657_p9)
}
 0x952   : > { %s1661_s22 = scalar_lea.hbm %s2050_s0, 128  ;;  %s1665_s17 = scalar_lea.hbm %s2106_s12, 256 }
 0x953   : > { %p1662_p10 = scmp.ne.s32.totalorder %s2050_s0, %s1661_s22  ;;  %p1666_p13 = scmp.lt.u32.totalorder %s2050_s0, %s2106_s12 }
 0x954   : > { %p1667_p0 = scmp.lt.u32.totalorder %s1665_s17, %s1661_s22  ;;  %p1669_p2 = scmp.lt.u32.totalorder %s1661_s22, %s2050_s0 }
 0x955   : > { %p1663_p11 = pnand %p1662_p10, %p1831_p5 }
 0x956   : > { %p1668_p1 = por %p1667_p0, %p1666_p13 }
 0x957   : > { %p1664_p12 = pneg %p1663_p11 }
 0x958   : > { %p1670_p3 = por %p1669_p2, %p1668_p1 }
 0x95a   : > { %p1671_p4 = pnand %p1670_p3, %p1664_p12 }
 0x95c   : > { %1674 = shalt.err (!%p1671_p4)
}
 0x95d   : > { %1557 = dma.vmem_to_hbm [thread:$0]  (%p1831_p5), %s2052_s16, 128, %s2050_s0, %s1262_s20  }
 0x95e PF: > { %p1568_p7 = scmp.ge.s32.totalorder %s1713_s28, 2  ;;  %s1305_s27 = sand.u32 1, %s1701_s25  }
 0x95f   : > { %s1306_s1 = scalar_lea.sflag [#allocation3], %s1305_s27 }
 0x960   : > { %p1562_p8 = pnand %p1568_p7, %p1835_p6 }
 0x962   : > { %1692 = dma.done.wait (!%p1562_p8), %s1306_s1, 128  }
 0x963   : > { %1694 = vsyncadd (!%p1562_p8), %s1306_s1, 4294967168  ;;  %s1315_s29 = scalar_lea.sflag [#allocation5], %s1305_s27 }
 0x964   : > { %1696 = dma.done.wait (!%p1562_p8), %s1315_s29, 128  }
 0x965   : > { %1698 = vsyncadd (!%p1562_p8), %s1315_s29, 4294967168  ;;  %s2121_s18 = sld [smem:[#allocation8_spill]]  ;;  %s2122_s27 = sld [smem:[#allocation9_spill]] }
 0x966   : > { %p27_p5 = scmp.ge.s32.totalorder %s1818_s14, 4   ;;  %s2123_s25 = smov %s1705_s26 }
 0x967   : > { %s2125_s28 = smov %s1818_s14 }
 0x968   :  { %29 = sbr.rel (!%p27_p5) target bundleno = 8 (0x8), region = 120 }
 0x96b   : > { %s2124_s26 = smov %s2121_s18 }
 0x96f   :  { %1320 = vsyncpa [#allocation3], 1 }
 0x970   :  { %1322 = vsyncpa [#allocation3 + $0x1], 1 }
 0x971   :  { %1323 = vsyncpa [#allocation5], 1 }
 0x972   :  { %1325 = vsyncpa [#allocation5 + $0x1], 1 }

</bundles_post_ra>
